<compile_context>
chip_gen: v7x
topology: tpu7x:2x2x1
jax: 0.10.0
libtpu: 0.0.40
codegen_flags: <defaults>
</compile_context>

<pallas_src>
import functools

import jax
import jax.numpy as jnp
from jax.experimental import pallas as pl
from jax.experimental.pallas import tpu as pltpu

PAD = 128                      # lane-dense width for hidden / output features
NUM_LAYERS = 4
LAYER_DIMS = [10, 20, 15]      # hidden widths (in -> 10 -> 20 -> 15 -> out)


def _round_up(x, m):
    return ((x + m - 1) // m) * m


def mlp_kernel(x_ref, w1_ref, w_ref, b_ref, out_ref):
    """x_ref: (tb, in_dim) f32, w1_ref: (in_dim, 128), w_ref: (3, 128, 128),
    b_ref: (4, 128) f32, out_ref: (tb, 128) f32.
    Dropout (p=0.1) is identity in eval mode, so it is omitted."""
    cdt = w1_ref.dtype                       # matmul-input dtype (f32 or bf16)
    b = b_ref[...]                           # (4, 128) f32, single small load

    # fc1 + relu  (K = in_dim, unpadded)
    h = jnp.dot(x_ref[...].astype(cdt), w1_ref[...],
                preferred_element_type=jnp.float32) + b[0:1, :]
    h = jnp.maximum(h, 0.0)
    # fc2 + relu
    h = jnp.dot(h.astype(cdt), w_ref[0],
                preferred_element_type=jnp.float32) + b[1:2, :]
    h = jnp.maximum(h, 0.0)
    # fc3 + relu
    h = jnp.dot(h.astype(cdt), w_ref[1],
                preferred_element_type=jnp.float32) + b[2:3, :]
    h = jnp.maximum(h, 0.0)
    # fc4 (logits, no activation) -- lane-dense unmasked (tb, 128) store
    out_ref[...] = jnp.dot(h.astype(cdt), w_ref[2],
                           preferred_element_type=jnp.float32) + b[3:4, :]


def _choose_tiles(batch, block_batch):
    """Pick (tb, pad_batch): tb multiple of 8, last-tile waste < 8 rows/tile,
    and >=2 grid steps at large batch so v7x can shard the 'parallel' axis."""
    pad8 = _round_up(max(batch, 8), 8)
    tb_target = max(8, min(block_batch, pad8))
    n_tiles = -(-pad8 // tb_target)
    if pad8 >= 1024 and n_tiles < 2:     # give v7x's 2nd TensorCore work
        n_tiles = 2
    tb = _round_up(-(-pad8 // n_tiles), 8)
    return tb, n_tiles * tb


@functools.partial(jax.jit,
                   static_argnames=("out_dim", "block_batch", "slice_output"))
def simple_mlp(x, w1, w_rest, b_packed, *, out_dim,
               block_batch=4096, slice_output=True):
    """Forward pass: x [B, in_dim] f32 -> logits [B, out_dim] f32
    (or lane-padded [pad_batch, 128] f32 when slice_output=False)."""
    batch, in_dim = x.shape
    tb, pad_batch = _choose_tiles(batch, block_batch)

    # Row-pad only (few rows, narrow in_dim) -- the 128-lane activation pad is
    # gone.  Skipped entirely when batch already divides the tile.
    if pad_batch != batch:
        x = jnp.pad(x, ((0, pad_batch - batch), (0, 0)))

    flops = 2 * batch * (in_dim * 10 + 10 * 20 + 20 * 15 + 15 * out_dim)
    bytes_accessed = (x.size * 4
                      + w1.size * w1.dtype.itemsize
                      + w_rest.size * w_rest.dtype.itemsize
                      + b_packed.size * 4
                      + pad_batch * PAD * 4)

    resident = dict(pipeline_mode=pl.Buffered(1))   # constant-index operands

    out_padded = pl.pallas_call(
        mlp_kernel,
        out_shape=jax.ShapeDtypeStruct((pad_batch, PAD), jnp.float32),
        grid=(pad_batch // tb,),
        in_specs=[
            pl.BlockSpec((tb, in_dim), lambda i: (i, 0)),                 # x (unpadded K)
            pl.BlockSpec((in_dim, PAD), lambda i: (0, 0), **resident),    # w1
            pl.BlockSpec((NUM_LAYERS - 1, PAD, PAD),
                         lambda i: (0, 0, 0), **resident),                # w2..w4 slab
            pl.BlockSpec((NUM_LAYERS, PAD), lambda i: (0, 0), **resident),  # biases
        ],
        out_specs=pl.BlockSpec((tb, PAD), lambda i: (i, 0)),
        compiler_params=pltpu.CompilerParams(
            dimension_semantics=("parallel",)),
        cost_estimate=pl.CostEstimate(
            flops=flops, transcendentals=0, bytes_accessed=bytes_accessed),
    )(x, w1, w_rest, b_packed)

    if slice_output:
        return out_padded[:batch, :out_dim]
    return out_padded   # lane-padded logits; fold the slice into the consumer


def init_params(key, input_size, output_size):
    """Deterministic init mimicking nn.Linear's U(-1/sqrt(fan_in), 1/sqrt(fan_in)).
    Weights stored transposed vs. PyTorch, i.e. [in_features, out_features]."""
    dims = [(input_size, 10), (10, 20), (20, 15), (15, output_size)]
    params = {}
    for i, (fan_in, fan_out) in enumerate(dims, start=1):
        key, kw, kb = jax.random.split(key, 3)
        bound = 1.0 / jnp.sqrt(jnp.float32(fan_in))
        params[f"w{i}"] = jax.random.uniform(
            kw, (fan_in, fan_out), jnp.float32, minval=-bound, maxval=bound)
        params[f"b{i}"] = jax.random.uniform(
            kb, (1, fan_out), jnp.float32, minval=-bound, maxval=bound)
    return params


def pack_params(params, input_size, output_size, compute_dtype=jnp.float32):
    """Pack layer-1 weights as a separate (in_dim, 128) operand (K unpadded),
    layers 2-4 as one [3, 128, 128] slab and biases as [4, 128] f32, all
    zero-padded to lane-dense 128 widths (padding is exact)."""
    dims_in = [input_size] + LAYER_DIMS
    dims_out = LAYER_DIMS + [output_size]

    w1 = jnp.zeros((input_size, PAD), compute_dtype)
    w1 = w1.at[:, :dims_out[0]].set(params["w1"].astype(compute_dtype))

    w_rest = jnp.zeros((NUM_LAYERS - 1, PAD, PAD), compute_dtype)
    b_packed = jnp.zeros((NUM_LAYERS, PAD), jnp.float32)
    b_packed = b_packed.at[0, :dims_out[0]].set(params["b1"][0])
    for i in range(1, NUM_LAYERS):
        w_rest = w_rest.at[i - 1, :dims_in[i], :dims_out[i]].set(
            params[f"w{i + 1}"].astype(compute_dtype))
        b_packed = b_packed.at[i, :dims_out[i]].set(params[f"b{i + 1}"][0])
    return w1, w_rest, b_packed


def reference_mlp(x, params):
    h = jnp.maximum(x @ params["w1"] + params["b1"], 0.0)
    h = jnp.maximum(h @ params["w2"] + params["b2"], 0.0)
    h = jnp.maximum(h @ params["w3"] + params["b3"], 0.0)
    return h @ params["w4"] + params["b4"]


if __name__ == "__main__":
    # CSV-derived feature/class counts are unknown; pick input_size=12,
    # output_size=3 (medal classes), batch=64 (small, > one sublane tile).
    batch, input_size, output_size = 64, 12, 3

    key = jax.random.PRNGKey(0)
    key, kx = jax.random.split(key)
    x = jax.random.normal(kx, (batch, input_size), jnp.float32)
    params = init_params(key, input_size, output_size)
    ref = reference_mlp(x, params)

    # f32 matmul-input path: tight parity with the PyTorch f32 nn.Linear stack.
    w1_f32, wr_f32, b_f32 = pack_params(params, input_size, output_size,
                                        compute_dtype=jnp.float32)
    out = simple_mlp(x, w1_f32, wr_f32, b_f32, out_dim=output_size)
    out = jax.block_until_ready(out)
    assert out.shape == (batch, output_size)
    assert jnp.allclose(out, ref, atol=1e-5, rtol=1e-5), "f32 mismatch vs reference"

    # bf16 matmul-input path (perf review item), accuracy-gated with a looser
    # tolerance -- f32 accumulation on the MXU keeps error at the ~1e-3 level.
    w1_bf, wr_bf, b_bf = pack_params(params, input_size, output_size,
                                     compute_dtype=jnp.bfloat16)
    out_bf16 = jax.block_until_ready(
        simple_mlp(x, w1_bf, wr_bf, b_bf, out_dim=output_size))
    assert out_bf16.shape == (batch, output_size)
    assert jnp.allclose(out_bf16, ref, atol=5e-2, rtol=5e-2), "bf16 accuracy gate failed"

    print("KERNEL_OK")
</pallas_src>

<mosaic_0001>
module attributes {stable_mosaic.version = 11 : i64} {
  func.func @mlp_kernel(%arg0: i32, %arg1: memref<64x12xf32, #tpu.memory_space<vmem>>, %arg2: memref<12x128xf32, #tpu.memory_space<vmem>>, %arg3: memref<3x128x128xf32, #tpu.memory_space<vmem>>, %arg4: memref<4x128xf32, #tpu.memory_space<vmem>>, %arg5: memref<64x128xf32, #tpu.memory_space<vmem>>) attributes {dimension_semantics = [#tpu.dimension_semantics<parallel>], iteration_bounds = array<i64: 1>, scalar_prefetch = 0 : i64, scratch_operands = 0 : i64, tpu.core_type = #tpu.core_type<tc>, window_params = [{transform_indices = @transform_0, window_bounds = array<i64: 64, 12>}, {pipeline_mode = #tpu.pipeline_mode<synchronous>, transform_indices = @transform_1, window_bounds = array<i64: 12, 128>}, {pipeline_mode = #tpu.pipeline_mode<synchronous>, transform_indices = @transform_2, window_bounds = array<i64: 3, 128, 128>}, {pipeline_mode = #tpu.pipeline_mode<synchronous>, transform_indices = @transform_3, window_bounds = array<i64: 4, 128>}, {transform_indices = @transform_4, window_bounds = array<i64: 64, 128>}]} {
    %c0 = arith.constant 0 : index
    %c0_0 = arith.constant 0 : index
    %0 = vector.load %arg4[%c0, %c0_0] : memref<4x128xf32, #tpu.memory_space<vmem>>, vector<4x128xf32>
    %c0_1 = arith.constant 0 : index
    %c0_2 = arith.constant 0 : index
    %1 = vector.load %arg1[%c0_1, %c0_2] : memref<64x12xf32, #tpu.memory_space<vmem>>, vector<64x12xf32>
    %c0_3 = arith.constant 0 : index
    %c0_4 = arith.constant 0 : index
    %2 = vector.load %arg2[%c0_3, %c0_4] : memref<12x128xf32, #tpu.memory_space<vmem>>, vector<12x128xf32>
    %cst = arith.constant dense<0.000000e+00> : vector<64x128xf32>
    %3 = tpu.matmul %1, %2, %cst {dimension_numbers = #tpu.dot_dimension_numbers<[1], [0], [0], [1], [0, 0, 1, 1], [], []>} : vector<64x12xf32>, vector<12x128xf32>, vector<64x128xf32> -> vector<64x128xf32>
    %4 = vector.extract_strided_slice %0 {offsets = [0, 0], sizes = [1, 128], strides = [1, 1]} : vector<4x128xf32> to vector<1x128xf32>
    %5 = vector.broadcast %4 : vector<1x128xf32> to vector<64x128xf32>
    %6 = arith.addf %3, %5 : vector<64x128xf32>
    %cst_5 = arith.constant 0.000000e+00 : f32
    %7 = vector.broadcast %cst_5 : f32 to vector<64x128xf32>
    %8 = arith.maximumf %6, %7 : vector<64x128xf32>
    %c0_6 = arith.constant 0 : index
    %c0_7 = arith.constant 0 : index
    %c0_8 = arith.constant 0 : index
    %9 = vector.load %arg3[%c0_6, %c0_7, %c0_8] : memref<3x128x128xf32, #tpu.memory_space<vmem>>, vector<1x128x128xf32>
    %10 = vector.shape_cast %9 : vector<1x128x128xf32> to vector<128x128xf32>
    %cst_9 = arith.constant dense<0.000000e+00> : vector<64x128xf32>
    %11 = tpu.matmul %8, %10, %cst_9 {dimension_numbers = #tpu.dot_dimension_numbers<[1], [0], [0], [1], [0, 0, 1, 1], [], []>} : vector<64x128xf32>, vector<128x128xf32>, vector<64x128xf32> -> vector<64x128xf32>
    %12 = vector.extract_strided_slice %0 {offsets = [1, 0], sizes = [1, 128], strides = [1, 1]} : vector<4x128xf32> to vector<1x128xf32>
    %13 = vector.broadcast %12 : vector<1x128xf32> to vector<64x128xf32>
    %14 = arith.addf %11, %13 : vector<64x128xf32>
    %cst_10 = arith.constant 0.000000e+00 : f32
    %15 = vector.broadcast %cst_10 : f32 to vector<64x128xf32>
    %16 = arith.maximumf %14, %15 : vector<64x128xf32>
    %c1 = arith.constant 1 : index
    %c0_11 = arith.constant 0 : index
    %c0_12 = arith.constant 0 : index
    %17 = vector.load %arg3[%c1, %c0_11, %c0_12] : memref<3x128x128xf32, #tpu.memory_space<vmem>>, vector<1x128x128xf32>
    %18 = vector.shape_cast %17 : vector<1x128x128xf32> to vector<128x128xf32>
    %cst_13 = arith.constant dense<0.000000e+00> : vector<64x128xf32>
    %19 = tpu.matmul %16, %18, %cst_13 {dimension_numbers = #tpu.dot_dimension_numbers<[1], [0], [0], [1], [0, 0, 1, 1], [], []>} : vector<64x128xf32>, vector<128x128xf32>, vector<64x128xf32> -> vector<64x128xf32>
    %20 = vector.extract_strided_slice %0 {offsets = [2, 0], sizes = [1, 128], strides = [1, 1]} : vector<4x128xf32> to vector<1x128xf32>
    %21 = vector.broadcast %20 : vector<1x128xf32> to vector<64x128xf32>
    %22 = arith.addf %19, %21 : vector<64x128xf32>
    %cst_14 = arith.constant 0.000000e+00 : f32
    %23 = vector.broadcast %cst_14 : f32 to vector<64x128xf32>
    %24 = arith.maximumf %22, %23 : vector<64x128xf32>
    %c2 = arith.constant 2 : index
    %c0_15 = arith.constant 0 : index
    %c0_16 = arith.constant 0 : index
    %25 = vector.load %arg3[%c2, %c0_15, %c0_16] : memref<3x128x128xf32, #tpu.memory_space<vmem>>, vector<1x128x128xf32>
    %26 = vector.shape_cast %25 : vector<1x128x128xf32> to vector<128x128xf32>
    %cst_17 = arith.constant dense<0.000000e+00> : vector<64x128xf32>
    %27 = tpu.matmul %24, %26, %cst_17 {dimension_numbers = #tpu.dot_dimension_numbers<[1], [0], [0], [1], [0, 0, 1, 1], [], []>} : vector<64x128xf32>, vector<128x128xf32>, vector<64x128xf32> -> vector<64x128xf32>
    %28 = vector.extract_strided_slice %0 {offsets = [3, 0], sizes = [1, 128], strides = [1, 1]} : vector<4x128xf32> to vector<1x128xf32>
    %29 = vector.broadcast %28 : vector<1x128xf32> to vector<64x128xf32>
    %30 = arith.addf %27, %29 : vector<64x128xf32>
    %c0_18 = arith.constant 0 : index
    %c0_19 = arith.constant 0 : index
    %31 = vector.load %arg5[%c0_18, %c0_19] : memref<64x128xf32, #tpu.memory_space<vmem>>, vector<64x128xf32>
    tpu.vector_store %arg5[%c0_18, %c0_19], %30 {strides = array<i32>} : memref<64x128xf32, #tpu.memory_space<vmem>>, vector<64x128xf32>,
    return
  }
  func.func @transform_0(%arg0: i32) -> (i32, i32) {
    %c0_i32 = arith.constant 0 : i32
    %c0_i32_0 = arith.constant 0 : i32
    return %arg0, %c0_i32 : i32, i32
  }
  func.func @transform_1(%arg0: i32) -> (i32, i32) {
    %c0_i32 = arith.constant 0 : i32
    %c0_i32_0 = arith.constant 0 : i32
    %c0_i32_1 = arith.constant 0 : i32
    return %c0_i32, %c0_i32_0 : i32, i32
  }
  func.func @transform_2(%arg0: i32) -> (i32, i32, i32) {
    %c0_i32 = arith.constant 0 : i32
    %c0_i32_0 = arith.constant 0 : i32
    %c0_i32_1 = arith.constant 0 : i32
    %c0_i32_2 = arith.constant 0 : i32
    return %c0_i32, %c0_i32_0, %c0_i32_1 : i32, i32, i32
  }
  func.func @transform_3(%arg0: i32) -> (i32, i32) {
    %c0_i32 = arith.constant 0 : i32
    %c0_i32_0 = arith.constant 0 : i32
    %c0_i32_1 = arith.constant 0 : i32
    return %c0_i32, %c0_i32_0 : i32, i32
  }
  func.func @transform_4(%arg0: i32) -> (i32, i32) {
    %c0_i32 = arith.constant 0 : i32
    %c0_i32_0 = arith.constant 0 : i32
    return %arg0, %c0_i32 : i32, i32
  }
}

</mosaic_0001>

<bundles_post_ra>
// kernel: simple_mlp.1
= control target key start
LH: loop header
LB: loop body
LE: loop exit
PB: predicated region body
PF: predicated region fallthrough
CT: control target
= control target key end

     0   :  { %9 = vsyncpa [#allocation3], 0  ;;  %s979_s15 = smov [#allocation2]   ;;  %s1097_s0 = inlined_call_operand.vmem [shape: f32[64,12], index: 0, kind: input, shape index: {}]   ;;  %s1098_s1 = inlined_call_operand.vmem [shape: f32[12,128], index: 1, kind: input, shape index: {}]   ;;  %s1099_s2 = inlined_call_operand.hbm [shape: f32[3,128,128], index: 2, kind: input, shape index: {}]   ;;  %s1100_s3 = inlined_call_operand.vmem [shape: f32[4,128], index: 3, kind: input, shape index: {}]   ;;  %s1101_s4 = inlined_call_operand.vmem [shape: f32[64,128], index: 4, kind: output, shape index: {}]  }
   0x1   :  { %s19_s16 = sshll.u32 %s979_s15, 4  ;;  %s955_s19 = scalar_lea.hbm %s1099_s2, 6144  ;;  %s20_s16 = int_to_ptr.vmem [resolvable:$true] %s19_s16 }
   0x2   :  { %p956_p0 = scmp.ne.s32.totalorder %s1099_s2, %s955_s19  ;;  %p959_p1 = scmp.lt.u32.totalorder %s955_s19, %s1099_s2 }
   0x4   :  { %p961_p2 = pnand %p959_p1, %p956_p0 }
   0x6   :  { %964 = shalt.err (!%p961_p2)
}
   0x7   :  { %s965_s24 = scalar_lea.vmem %s20_s16, 6144  ;;  %p970_p4 = scmp.lt.s32.totalorder %s20_s16, %s20_s16 }
   0x8   :  { %p966_p3 = scmp.ne.s32.totalorder %s20_s16, %s965_s24  ;;  %p971_p5 = scmp.lt.s32.totalorder %s965_s24, %s965_s24 }
   0xa   :  { %p972_p6 = por %p971_p5, %p970_p4 }
   0xc   :  { %p973_p7 = pnand %p972_p6, %p966_p3 }
   0xe   :  { %976 = shalt.err (!%p973_p7)
}
   0xf   :  { %s980_s25 = smov 128   ;;  %s981_s26 = smov 8  }
  0x10   :  { %25 = dma.hbm_to_vmem [thread:$0]  %s1099_s2, 6144, %s20_s16, [#allocation3], %s980_s25, %s980_s25, %s981_s26  }
  0x11   :  { %977 = dma.done.wait [#allocation3], 6144  }
  0x12   :  { %978 = vsyncadd [#allocation3], 4294961152  ;;  %vm71_vm0 = vcmask 1043456   ;;  %vm46_vm1 = vcmask 97280   ;;  %vm982_vm2 = vmmov 1   ;;  %v40_v0 = vld [vmem:[%s1098_s1] sm:$0xff]  ;;  %v42_v56 = vlaneseq }
  0x13   :  { %vm834_vm3 = vmpackc.low %vm71_vm0, %vm982_vm2  ;;  %v41_v1 = vld [vmem:[%s1098_s1 + $0x8] sm:$0xf]  ;;  %v32_v2 = vld [vmem:[%s1097_s0] sm:$0xff] }
  0x14   :  { %v833_v3 = vpack.c.bf16 %v41_v1, %v40_v0  ;;  %689 = vmatprep.mubr.msk.f32.mxu0 %vm46_vm1, %v32_v2  ;;  %v188_v4 = vld [vmem:[#allocation2] sm:$0xff]  ;;  %v189_v5 = vld [vmem:[#allocation2 + $0x8] sm:$0xff]  ;;  %v190_v8 = vld [vmem:[#allocation2 + $0x10] sm:$0xff]  ;;  %v1058_v57 = vshrl.u32 %v42_v56, 7 }
  0x15   :  { %v33_v6 = vld [vmem:[%s1097_s0 + $0x8] sm:$0xff]  ;;  %v839_v7 = vpack.c.bf16 %v189_v5, %v188_v4  ;;  %v191_v9 = vld [vmem:[#allocation2 + $0x18] sm:$0xff]  ;;  %v34_v10 = vld [vmem:[%s1097_s0 + $0x10] sm:$0xff] }
  0x16   :  { %835 = vmatprep.subr.msk.bf16.mxu0 %vm834_vm3, %v833_v3  ;;  %v843_v11 = vpack.c.bf16 %v191_v9, %v190_v8  ;;  %v192_v12 = vld [vmem:[#allocation2 + $0x20] sm:$0xff]  ;;  %v193_v13 = vld [vmem:[#allocation2 + $0x28] sm:$0xff]  ;;  %v35_v14 = vld [vmem:[%s1097_s0 + $0x18] sm:$0xff]  ;;  %v44_v58 = vsub.s32 0, %v1058_v57 }
  0x17   :  { %838 = vmatpush3.bf16.msk.msra.mxu0 %vm834_vm3, %v833_v3  ;;  %840 = vmatprep.subr.bf16.mxu1 %v839_v7  ;;  %v847_v15 = vpack.c.bf16 %v193_v13, %v192_v12  ;;  %v36_v16 = vld [vmem:[%s1097_s0 + $0x20] sm:$0xff]  ;;  %v194_v17 = vld [vmem:[#allocation2 + $0x30] sm:$0xff]  ;;  %v195_v18 = vld [vmem:[#allocation2 + $0x38] sm:$0xff] }
  0x18   :  { %842 = vmatpush3.bf16.msra.mxu1 %v839_v7  ;;  %v37_v19 = vld [vmem:[%s1097_s0 + $0x28] sm:$0xff]  ;;  %v851_v20 = vpack.c.bf16 %v195_v18, %v194_v17  ;;  %v38_v21 = vld [vmem:[%s1097_s0 + $0x30] sm:$0xff]  ;;  %v196_v22 = vld [vmem:[#allocation2 + $0x40] sm:$0xff] }
  0x19   :  { %844 = vmatprep.subr.bf16.mxu1 %v843_v11  ;;  %v197_v23 = vld [vmem:[#allocation2 + $0x48] sm:$0xff]  ;;  %v39_v24 = vld [vmem:[%s1097_s0 + $0x38] sm:$0xff]  ;;  %v198_v26 = vld [vmem:[#allocation2 + $0x50] sm:$0xff] }
  0x1a   :  { %690 = vmatmul.mubr.msk.f32.vlgmr.msra.gmra.mrb[0].mxu0 %vm46_vm1, %v33_v6  ;;  %v855_v25 = vpack.c.bf16 %v197_v23, %v196_v22  ;;  %v199_v27 = vld [vmem:[#allocation2 + $0x58] sm:$0xff]  ;;  %v200_v29 = vld [vmem:[#allocation2 + $0x60] sm:$0xff]  ;;  %v201_v30 = vld [vmem:[#allocation2 + $0x68] sm:$0xff] }
  0x1b   :  { %692 = vmatprep.mubr.msk.f32.mxu0 %vm46_vm1, %v34_v10  ;;  %v859_v28 = vpack.c.bf16 %v199_v27, %v198_v26  ;;  %v863_v31 = vpack.c.bf16 %v201_v30, %v200_v29  ;;  %v202_v32 = vld [vmem:[#allocation2 + $0x70] sm:$0xff]  ;;  %v203_v33 = vld [vmem:[#allocation2 + $0x78] sm:$0xff]  ;;  %v322_v35 = vld [vmem:[#allocation2 + $0x80] sm:$0xff] }
  0x1c   :  { %846 = vmatpush3.bf16.msra.mxu1 %v843_v11  ;;  %v867_v34 = vpack.c.bf16 %v203_v33, %v202_v32  ;;  %v323_v36 = vld [vmem:[#allocation2 + $0x88] sm:$0xff]  ;;  %v324_v37 = vld [vmem:[#allocation2 + $0x90] sm:$0xff]  ;;  %v325_v39 = vld [vmem:[#allocation2 + $0x98] sm:$0xff] }
  0x1d   :  { %848 = vmatprep.subr.bf16.mxu1 %v847_v15  ;;  %v871_v38 = vpack.c.bf16 %v323_v36, %v322_v35  ;;  %v875_v40 = vpack.c.bf16 %v325_v39, %v324_v37  ;;  %v326_v41 = vld [vmem:[#allocation2 + $0xa0] sm:$0xff]  ;;  %v327_v42 = vld [vmem:[#allocation2 + $0xa8] sm:$0xff]  ;;  %v328_v44 = vld [vmem:[#allocation2 + $0xb0] sm:$0xff] }
  0x1e   :  { %693 = vmatmul.mubr.msk.f32.gmra.mrb[2].mxu0 %vm46_vm1, %v35_v14  ;;  %v879_v43 = vpack.c.bf16 %v327_v42, %v326_v41  ;;  %v329_v45 = vld [vmem:[#allocation2 + $0xb8] sm:$0xff]  ;;  %v330_v47 = vld [vmem:[#allocation2 + $0xc0] sm:$0xff]  ;;  %v331_v48 = vld [vmem:[#allocation2 + $0xc8] sm:$0xff] }
  0x1f   :  { %695 = vmatprep.mubr.msk.f32.mxu0 %vm46_vm1, %v36_v16  ;;  %872 = vmatprep.subr.bf16.mxu0 %v871_v38  ;;  %v883_v46 = vpack.c.bf16 %v329_v45, %v328_v44  ;;  %v887_v49 = vpack.c.bf16 %v331_v48, %v330_v47  ;;  %v332_v50 = vld [vmem:[#allocation2 + $0xd0] sm:$0xff]  ;;  %v333_v51 = vld [vmem:[#allocation2 + $0xd8] sm:$0xff]  ;;  %v334_v53 = vld [vmem:[#allocation2 + $0xe0] sm:$0xff]  ;;  %v206_v45 = vsub.s32 1, %v1058_v57 }
  0x20   :  { %850 = vmatpush3.bf16.msra.mxu1 %v847_v15  ;;  %874 = vmatpush3.bf16.msra.mxu0 %v871_v38  ;;  %v891_v52 = vpack.c.bf16 %v333_v51, %v332_v50  ;;  %v335_v54 = vld [vmem:[#allocation2 + $0xe8] sm:$0xff]  ;;  %v1064_v59 = vld [vmem:[%s1100_s3] sm:$0xf]  ;;  %v337_v22 = vld [vmem:[#allocation2 + $0xf8] sm:$0xff] }
  0x21   :  { %852 = vmatprep.subr.bf16.mxu1 %v851_v20  ;;  %876 = vmatprep.subr.bf16.mxu0 %v875_v40  ;;  %v895_v55 = vpack.c.bf16 %v335_v54, %v334_v53  ;;  %v45_v60 = vrot.slane %v1064_v59, %v44_v58  ;;  %v458_v26 = vld [vmem:[#allocation2 + $0x110] sm:$0xff]  ;;  %v460_v30 = vld [vmem:[#allocation2 + $0x120] sm:$0xff]  ;;  %v465_v37 = vld [vmem:[#allocation2 + $0x148] sm:$0xff] }
  0x22   :  { %696 = vmatmul.mubr.msk.f32.gmra.mrb[4].mxu0 %vm46_vm1, %v37_v19  ;;  %v462_v33 = vld [vmem:[#allocation2 + $0x130] sm:$0xff]  ;;  %v464_v36 = vld [vmem:[#allocation2 + $0x140] sm:$0xff] }
  0x23   :  { %698 = vmatprep.mubr.msk.f32.mxu0 %vm46_vm1, %v38_v21  ;;  %v336_v21 = vld [vmem:[#allocation2 + $0xf0] sm:$0xff]  ;;  %v919_v38 = vpack.c.bf16 %v465_v37, %v464_v36  ;;  %v468_v42 = vld [vmem:[#allocation2 + $0x160] sm:$0xff] }
  0x24   :  { %854 = vmatpush3.bf16.msra.mxu1 %v851_v20  ;;  %878 = vmatpush3.bf16.msra.mxu0 %v875_v40  ;;  %v899_v23 = vpack.c.bf16 %v337_v22, %v336_v21  ;;  %v466_v39 = vld [vmem:[#allocation2 + $0x150] sm:$0xff]  ;;  %v467_v40 = vld [vmem:[#allocation2 + $0x158] sm:$0xff] }
  0x25   :  { %856 = vmatprep.subr.bf16.mxu1 %v855_v25  ;;  %880 = vmatprep.subr.bf16.mxu0 %v879_v43  ;;  %v923_v41 = vpack.c.bf16 %v467_v40, %v466_v39 }
  0x26   :  { %699 = vmatmul.mubr.msk.f32.gmra.mrb[6].mxu0 %vm46_vm1, %v39_v24  ;;  %v456_v24 = vld [vmem:[#allocation2 + $0x100] sm:$0xff] }
  0x28   :  { %858 = vmatpush3.bf16.msra.mxu1 %v855_v25  ;;  %882 = vmatpush3.bf16.msra.mxu0 %v879_v43  ;;  %v457_v25 = vld [vmem:[#allocation2 + $0x108] sm:$0xff] }
  0x29   :  { %860 = vmatprep.subr.bf16.mxu1 %v859_v28  ;;  %884 = vmatprep.subr.bf16.mxu0 %v883_v46  ;;  %v903_v27 = vpack.c.bf16 %v457_v25, %v456_v24  ;;  %v469_v43 = vld [vmem:[#allocation2 + $0x168] sm:$0xff] }
  0x2a   :  { %v927_v44 = vpack.c.bf16 %v469_v43, %v468_v42 }
  0x2c   :  { %862 = vmatpush3.bf16.msra.mxu1 %v859_v28  ;;  %886 = vmatpush3.bf16.msra.mxu0 %v883_v46  ;;  %v459_v28 = vld [vmem:[#allocation2 + $0x118] sm:$0xff]  ;;  %v207_v46 = vrot.slane %v1064_v59, %v206_v45 }
  0x2d   :  { %864 = vmatprep.subr.bf16.mxu1 %v863_v31  ;;  %888 = vmatprep.subr.bf16.mxu0 %v887_v49  ;;  %v907_v29 = vpack.c.bf16 %v459_v28, %v458_v26 }
  0x30   :  { %866 = vmatpush3.bf16.msra.mxu1 %v863_v31  ;;  %890 = vmatpush3.bf16.msra.mxu0 %v887_v49  ;;  %v461_v31 = vld [vmem:[#allocation2 + $0x128] sm:$0xff] }
  0x31   :  { %868 = vmatprep.subr.bf16.mxu1 %v867_v34  ;;  %892 = vmatprep.subr.bf16.mxu0 %v891_v52  ;;  %v911_v32 = vpack.c.bf16 %v461_v31, %v460_v30 }
  0x34   :  { %870 = vmatpush3.bf16.msra.mxu1 %v867_v34  ;;  %894 = vmatpush3.bf16.msra.mxu0 %v891_v52  ;;  %v463_v34 = vld [vmem:[#allocation2 + $0x138] sm:$0xff] }
  0x35   :  { %896 = vmatprep.subr.bf16.mxu0 %v895_v55  ;;  %935 = vmatprep.subr.bf16.mxu1 %v903_v27  ;;  %v915_v35 = vpack.c.bf16 %v463_v34, %v462_v33 }
  0x38   :  { %898 = vmatpush3.bf16.msra.mxu0 %v895_v55 }
  0x39   :  { %900 = vmatprep.subr.bf16.mxu0 %v899_v23 }
  0x3c   :  { %902 = vmatpush3.bf16.msra.mxu0 %v899_v23 }
  0x3d   :  { %904 = vmatprep.subr.bf16.mxu0 %v903_v27 }
  0xed   :  { %v691_v61 = vpop.f32.mrb[0].mxu0 }
  0xee   :  { %v147_v62 = vadd.f32 %v691_v61, %v45_v60  ;;  %v141_v63 = vpop.f32.mrb[1].mxu0 }
  0xef   :  { %v142_v0 = vadd.f32 %v141_v63, %v45_v60 }
  0xf0   :  { %v181_v3 = vmax.f32 %v147_v62, 0.0 }
  0xf1   :  { %v694_v1 = vpop.f32.mrb[2].mxu0  ;;  %v180_v2 = vmax.f32 %v142_v0, 0.0 }
  0xf2   :  { %v157_v4 = vadd.f32 %v694_v1, %v45_v60  ;;  %v151_v5 = vpop.f32.mrb[3].mxu0 }
  0xf3   :  { %v152_v6 = vadd.f32 %v151_v5, %v45_v60  ;;  %733 = vmatprep.mubr.f32.mxu1 %v180_v2 }
  0xf4   :  { %734 = vmatmul.mubr.f32.vlgmr.msra.gmra.mrb[0].mxu1 %v181_v3  ;;  %v183_v9 = vmax.f32 %v157_v4, 0.0 }
  0xf5   :  { %v182_v7 = vmax.f32 %v152_v6, 0.0  ;;  %v697_v8 = vpop.f32.mrb[4].mxu0  ;;  %943 = vmatpush3.bf16.msra.mxu1 %v903_v27 }
  0xf6   :  { %v167_v10 = vadd.f32 %v697_v8, %v45_v60  ;;  %v161_v11 = vpop.f32.mrb[5].mxu0  ;;  %936 = vmatprep.subr.bf16.mxu1 %v907_v29 }
  0xf7   :  { %v162_v12 = vadd.f32 %v161_v11, %v45_v60  ;;  %736 = vmatprep.mubr.f32.mxu1 %v182_v7 }
  0xf8   :  { %737 = vmatmul.mubr.f32.gmra.mrb[2].mxu1 %v183_v9  ;;  %v185_v15 = vmax.f32 %v167_v10, 0.0  ;;  %v470_v9 = vld [vmem:[#allocation2 + $0x170] sm:$0xff]  ;;  %v471_v10 = vld [vmem:[#allocation2 + $0x178] sm:$0xff] }
  0xf9   :  { %v184_v13 = vmax.f32 %v162_v12, 0.0  ;;  %v700_v14 = vpop.f32.mrb[6].mxu0  ;;  %944 = vmatpush3.bf16.msra.mxu1 %v907_v29  ;;  %v931_v11 = vpack.c.bf16 %v471_v10, %v470_v9  ;;  %v340_v12 = vsub.s32 2, %v1058_v57 }
  0xfa   :  { %v177_v16 = vadd.f32 %v700_v14, %v45_v60  ;;  %v171_v17 = vpop.f32.mrb[7].mxu0  ;;  %937 = vmatprep.subr.bf16.mxu1 %v911_v32 }
  0xfb   :  { %v172_v18 = vadd.f32 %v171_v17, %v45_v60  ;;  %739 = vmatprep.mubr.f32.mxu1 %v184_v13  ;;  %v341_v13 = vrot.slane %v1064_v59, %v340_v12 }
  0xfc   :  { %740 = vmatmul.mubr.f32.gmra.mrb[4].mxu1 %v185_v15  ;;  %v187_v20 = vmax.f32 %v177_v16, 0.0 }
  0xfd   :  { %v186_v19 = vmax.f32 %v172_v18, 0.0  ;;  %945 = vmatpush3.bf16.msra.mxu1 %v911_v32 }
  0xfe   :  { %938 = vmatprep.subr.bf16.mxu1 %v915_v35 }
  0xff   :  { %742 = vmatprep.mubr.f32.mxu1 %v186_v19 }
 0x100   :  { %743 = vmatmul.mubr.f32.gmra.mrb[6].mxu1 %v187_v20 }
 0x101   :  { %946 = vmatpush3.bf16.msra.mxu1 %v915_v35 }
 0x102   :  { %939 = vmatprep.subr.bf16.mxu1 %v919_v38 }
 0x105   :  { %947 = vmatpush3.bf16.msra.mxu1 %v919_v38 }
 0x106   :  { %940 = vmatprep.subr.bf16.mxu1 %v923_v41 }
 0x109   :  { %948 = vmatpush3.bf16.msra.mxu1 %v923_v41 }
 0x10a   :  { %941 = vmatprep.subr.bf16.mxu1 %v927_v44 }
 0x10d   :  { %949 = vmatpush3.bf16.msra.mxu1 %v927_v44 }
 0x10e   :  { %942 = vmatprep.subr.bf16.mxu1 %v931_v11 }
 0x111   :  { %950 = vmatpush3.bf16.msra.mxu1 %v931_v11 }
 0x1c7   :  { %v735_v47 = vpop.f32.mrb[0].mxu1 }
 0x1c8   :  { %v280_v48 = vadd.f32 %v735_v47, %v207_v46  ;;  %v274_v49 = vpop.f32.mrb[1].mxu1 }
 0x1c9   :  { %v275_v50 = vadd.f32 %v274_v49, %v207_v46 }
 0x1ca   :  { %v314_v53 = vmax.f32 %v280_v48, 0.0 }
 0x1cb   :  { %v313_v51 = vmax.f32 %v275_v50, 0.0  ;;  %v738_v52 = vpop.f32.mrb[2].mxu1 }
 0x1cc   :  { %v290_v54 = vadd.f32 %v738_v52, %v207_v46  ;;  %v284_v55 = vpop.f32.mrb[3].mxu1 }
 0x1cd   :  { %v285_v56 = vadd.f32 %v284_v55, %v207_v46  ;;  %777 = vmatprep.mubr.f32.mxu0 %v313_v51 }
 0x1ce   :  { %778 = vmatmul.mubr.f32.vlgmr.msra.gmra.mrb[8].mxu0 %v314_v53  ;;  %v316_v61 = vmax.f32 %v290_v54, 0.0 }
 0x1cf   :  { %v315_v58 = vmax.f32 %v285_v56, 0.0  ;;  %v741_v60 = vpop.f32.mrb[4].mxu1  ;;  %906 = vmatpush3.bf16.msra.mxu0 %v903_v27 }
 0x1d0   :  { %v300_v62 = vadd.f32 %v741_v60, %v207_v46  ;;  %v294_v63 = vpop.f32.mrb[5].mxu1  ;;  %908 = vmatprep.subr.bf16.mxu0 %v907_v29 }
 0x1d1   :  { %v295_v0 = vadd.f32 %v294_v63, %v207_v46  ;;  %780 = vmatprep.mubr.f32.mxu0 %v315_v58 }
 0x1d2   :  { %781 = vmatmul.mubr.f32.gmra.mrb[10].mxu0 %v316_v61  ;;  %v318_v3 = vmax.f32 %v300_v62, 0.0 }
 0x1d3   :  { %v317_v1 = vmax.f32 %v295_v0, 0.0  ;;  %v744_v2 = vpop.f32.mrb[6].mxu1  ;;  %910 = vmatpush3.bf16.msra.mxu0 %v907_v29 }
 0x1d4   :  { %v310_v4 = vadd.f32 %v744_v2, %v207_v46  ;;  %v304_v5 = vpop.f32.mrb[7].mxu1  ;;  %912 = vmatprep.subr.bf16.mxu0 %v911_v32 }
 0x1d5   :  { %v305_v6 = vadd.f32 %v304_v5, %v207_v46  ;;  %783 = vmatprep.mubr.f32.mxu0 %v317_v1 }
 0x1d6   :  { %784 = vmatmul.mubr.f32.gmra.mrb[12].mxu0 %v318_v3  ;;  %v320_v8 = vmax.f32 %v310_v4, 0.0 }
 0x1d7   :  { %v319_v7 = vmax.f32 %v305_v6, 0.0  ;;  %914 = vmatpush3.bf16.msra.mxu0 %v911_v32 }
 0x1d8   :  { %916 = vmatprep.subr.bf16.mxu0 %v915_v35 }
 0x1d9   :  { %786 = vmatprep.mubr.f32.mxu0 %v319_v7 }
 0x1da   :  { %787 = vmatmul.mubr.f32.gmra.mrb[14].mxu0 %v320_v8 }
 0x1db   :  { %918 = vmatpush3.bf16.msra.mxu0 %v915_v35 }
 0x1dc   :  { %920 = vmatprep.subr.bf16.mxu0 %v919_v38 }
 0x1df   :  { %922 = vmatpush3.bf16.msra.mxu0 %v919_v38  ;;  %v474_v38 = vsub.s32 3, %v1058_v57 }
 0x1e0   :  { %924 = vmatprep.subr.bf16.mxu0 %v923_v41 }
 0x1e1   :  { %v475_v39 = vrot.slane %v1064_v59, %v474_v38 }
 0x1e3   :  { %926 = vmatpush3.bf16.msra.mxu0 %v923_v41 }
 0x1e4   :  { %928 = vmatprep.subr.bf16.mxu0 %v927_v44 }
 0x1e7   :  { %930 = vmatpush3.bf16.msra.mxu0 %v927_v44 }
 0x1e8   :  { %932 = vmatprep.subr.bf16.mxu0 %v931_v11 }
 0x1eb   :  { %934 = vmatpush3.bf16.msra.mxu0 %v931_v11 }
 0x2a1   :  { %v779_v14 = vpop.f32.mrb[8].mxu0 }
 0x2a2   :  { %v414_v15 = vadd.f32 %v779_v14, %v341_v13  ;;  %v408_v16 = vpop.f32.mrb[9].mxu0 }
 0x2a3   :  { %v409_v17 = vadd.f32 %v408_v16, %v341_v13 }
 0x2a4   :  { %v448_v20 = vmax.f32 %v414_v15, 0.0 }
 0x2a5   :  { %v447_v18 = vmax.f32 %v409_v17, 0.0  ;;  %v782_v19 = vpop.f32.mrb[10].mxu0 }
 0x2a6   :  { %v424_v21 = vadd.f32 %v782_v19, %v341_v13  ;;  %v418_v22 = vpop.f32.mrb[11].mxu0 }
 0x2a7   :  { %v419_v23 = vadd.f32 %v418_v22, %v341_v13  ;;  %821 = vmatprep.mubr.f32.mxu0 %v447_v18 }
 0x2a8   :  { %822 = vmatmul.mubr.f32.vlgmr.msra.gmra.mrb[16].mxu0 %v448_v20  ;;  %v450_v26 = vmax.f32 %v424_v21, 0.0 }
 0x2a9   :  { %v449_v24 = vmax.f32 %v419_v23, 0.0  ;;  %v785_v25 = vpop.f32.mrb[12].mxu0 }
 0x2aa   :  { %v434_v27 = vadd.f32 %v785_v25, %v341_v13  ;;  %v428_v28 = vpop.f32.mrb[13].mxu0 }
 0x2ab   :  { %v429_v29 = vadd.f32 %v428_v28, %v341_v13  ;;  %824 = vmatprep.mubr.f32.mxu1 %v449_v24 }
 0x2ac   :  { %825 = vmatmul.mubr.f32.vlgmr.msra.gmra.mrb[8].mxu1 %v450_v26  ;;  %v452_v32 = vmax.f32 %v434_v27, 0.0 }
 0x2ad   :  { %v451_v30 = vmax.f32 %v429_v29, 0.0  ;;  %v788_v31 = vpop.f32.mrb[14].mxu0 }
 0x2ae   :  { %v444_v33 = vadd.f32 %v788_v31, %v341_v13  ;;  %v438_v34 = vpop.f32.mrb[15].mxu0 }
 0x2af   :  { %v439_v35 = vadd.f32 %v438_v34, %v341_v13  ;;  %827 = vmatprep.mubr.f32.mxu1 %v451_v30 }
 0x2b0   :  { %828 = vmatmul.mubr.f32.gmra.mrb[10].mxu1 %v452_v32  ;;  %v454_v37 = vmax.f32 %v444_v33, 0.0 }
 0x2b1   :  { %v453_v36 = vmax.f32 %v439_v35, 0.0 }
 0x2b3   :  { %830 = vmatprep.mubr.f32.mxu1 %v453_v36 }
 0x2b4   :  { %831 = vmatmul.mubr.f32.gmra.mrb[12].mxu1 %v454_v37 }
 0x37b   :  { %v823_v40 = vpop.f32.mrb[16].mxu0 }
 0x37c   :  { %v548_v41 = vadd.f32 %v823_v40, %v475_v39  ;;  %v542_v42 = vpop.f32.mrb[17].mxu0 }
 0x37d   :  { %v543_v43 = vadd.f32 %v542_v42, %v475_v39 }
 0x37e   :  { %582 = vst [vmem:[%s1101_s4 + $0x8] sm:$0xff] %v548_v41 }
 0x37f   :  { %581 = vst [vmem:[%s1101_s4] sm:$0xff] %v543_v43  ;;  %v826_v44 = vpop.f32.mrb[8].mxu1 }
 0x380   :  { %v558_v45 = vadd.f32 %v826_v44, %v475_v39  ;;  %v552_v46 = vpop.f32.mrb[9].mxu1 }
 0x381   :  { %v553_v47 = vadd.f32 %v552_v46, %v475_v39 }
 0x382   :  { %584 = vst [vmem:[%s1101_s4 + $0x18] sm:$0xff] %v558_v45 }
 0x383   :  { %583 = vst [vmem:[%s1101_s4 + $0x10] sm:$0xff] %v553_v47  ;;  %v829_v57 = vpop.f32.mrb[10].mxu1 }
 0x384   :  { %v568_v59 = vadd.f32 %v829_v57, %v475_v39  ;;  %v562_v48 = vpop.f32.mrb[11].mxu1 }
 0x385   :  { %v563_v49 = vadd.f32 %v562_v48, %v475_v39 }
 0x386   :  { %586 = vst [vmem:[%s1101_s4 + $0x28] sm:$0xff] %v568_v59 }
 0x387   :  { %585 = vst [vmem:[%s1101_s4 + $0x20] sm:$0xff] %v563_v49  ;;  %v832_v50 = vpop.f32.mrb[12].mxu1 }
 0x388   :  { %v578_v51 = vadd.f32 %v832_v50, %v475_v39  ;;  %v572_v52 = vpop.f32.mrb[13].mxu1 }
 0x389   :  { %v573_v53 = vadd.f32 %v572_v52, %v475_v39 }
 0x38a   :  { %588 = vst [vmem:[%s1101_s4 + $0x38] sm:$0xff] %v578_v51 }
 0x38b   :  { %587 = vst [vmem:[%s1101_s4 + $0x30] sm:$0xff] %v573_v53 }
 0x38c   :  { %593 = vsyncpa [#allocation3], 1 }

</bundles_post_ra>
